<compile_context>
chip_gen: v5e
topology: v5e:2x2
jax: 0.10.0
libtpu: 0.0.40
codegen_flags: <defaults>
</compile_context>

<pallas_src>
import functools
import math

import jax
import jax.numpy as jnp
from jax.experimental import pallas as pl
from jax.experimental.pallas import tpu as pltpu


# ----------------------------------------------------------------------------
# Fused AsyCA kernel (one grid step == one image, (C, HW) orientation)
# ----------------------------------------------------------------------------

def _asyca_kernel(x1_ref, x2_ref, w_init_ref, w_dc_ref, w_ic_ref, b_ref,
                  o_ref):
    C = w_init_ref.shape[0]
    Cr = w_dc_ref.shape[0]

    x1 = x1_ref[0].astype(jnp.float32)              # (C, HW)
    x2 = x2_ref[0].astype(jnp.float32)              # (C, HW)

    # Global average pool FIRST (1x1 conv and spatial mean commute).
    m1 = jnp.mean(x1, axis=1, keepdims=True)        # (C, 1)
    m2 = jnp.mean(x2, axis=1, keepdims=True)        # (C, 1)
    m_cat = jnp.concatenate([m1, m2], axis=0)       # (2C, 1)

    b = b_ref[...]                                  # (C, 4) packed biases

    # conv_init applied to the pooled column.
    pooled = jnp.dot(w_init_ref[...], m_cat,
                     preferred_element_type=jnp.float32) + b[:, 0:1]  # (C,1)

    # conv_dc + ReLU
    z = jnp.dot(w_dc_ref[...], pooled,
                preferred_element_type=jnp.float32) + b[:Cr, 1:2]     # (Cr,1)
    z = jnp.maximum(z, 0.0)

    # conv_ic -> (2C, 1); split into the two softmax halves (sublane slices).
    ab = jnp.dot(w_ic_ref[...], z, preferred_element_type=jnp.float32)
    ab1 = ab[:C] + b[:, 2:3]                        # (C, 1)
    ab2 = ab[C:] + b[:, 3:4]                        # (C, 1)

    # Softmax over the 2 branches (dim=1 of the (N, 2, C, 1) reshape).
    mx = jnp.maximum(ab1, ab2)
    e1 = jnp.exp(ab1 - mx)
    e2 = jnp.exp(ab2 - mx)
    inv = 1.0 / (e1 + e2)                           # exact; only C elements
    a1 = e1 * inv
    a2 = e2 * inv                                   # (C, 1), lane-broadcast

    # V = a1 * x1 + a2 * x2
    v = x1 * a1 + x2 * a2                           # (C, HW)
    o_ref[0] = v.astype(o_ref.dtype)


# ----------------------------------------------------------------------------
# pallas_call builder
# ----------------------------------------------------------------------------

@functools.lru_cache(maxsize=None)
def _asyca_call(N, C, HW, Cr, dtype_name):
    dtype = jnp.dtype(dtype_name)

    x_spec = pl.BlockSpec((1, C, HW), lambda n: (n, 0, 0))
    w_init_spec = pl.BlockSpec((C, 2 * C), lambda n: (0, 0))
    w_dc_spec = pl.BlockSpec((Cr, C), lambda n: (0, 0))
    w_ic_spec = pl.BlockSpec((2 * C, Cr), lambda n: (0, 0))
    b_spec = pl.BlockSpec((C, 4), lambda n: (0, 0))

    itemsize = dtype.itemsize
    cost = pl.CostEstimate(
        flops=int(N * (2 * C * HW            # two spatial means
                       + 2 * C * 2 * C       # conv_init matvec
                       + 2 * Cr * C          # conv_dc
                       + 2 * 2 * C * Cr      # conv_ic
                       + 12 * C              # softmax misc
                       + 3 * C * HW)),       # a1*x1 + a2*x2
        transcendentals=int(N * 2 * C),
        bytes_accessed=int(itemsize * 3 * N * C * HW
                           + 4 * (2 * C * C + Cr * C + 2 * C * Cr + 4 * C)),
    )

    return pl.pallas_call(
        _asyca_kernel,
        out_shape=jax.ShapeDtypeStruct((N, C, HW), dtype),
        grid=(N,),
        in_specs=[x_spec, x_spec, w_init_spec, w_dc_spec, w_ic_spec, b_spec],
        out_specs=pl.BlockSpec((1, C, HW), lambda n: (n, 0, 0)),
        compiler_params=pltpu.CompilerParams(
            dimension_semantics=("parallel",)),
        cost_estimate=cost,
    )


# ----------------------------------------------------------------------------
# End-to-end jitted forward (NCHW in / NCHW out, PyTorch-style)
# ----------------------------------------------------------------------------

@jax.jit
def asyca_forward(params, x1_nchw, x2_nchw):
    N, C, H, W = x1_nchw.shape
    # NCHW -> (N, C, H*W) is a free reshape (no transpose): channels on
    # sublanes, the lane axis gets the full H*W spatial extent.
    x1 = x1_nchw.reshape(N, C, H * W)
    x2 = x2_nchw.reshape(N, C, H * W)
    Cr = params["w_dc"].shape[0]
    call = _asyca_call(N, C, H * W, Cr, jnp.dtype(x1.dtype).name)
    v = call(x1, x2, params["w_init"], params["w_dc"], params["w_ic"],
             params["b"])
    return v.reshape(N, C, H, W)


# ----------------------------------------------------------------------------
# Pure-JAX oracle following the ORIGINAL PyTorch op order (conv_init over
# every pixel, THEN pool) — also validates the pool-before-conv hoist.
# ----------------------------------------------------------------------------

def asyca_reference(params, x1_nchw, x2_nchw):
    N, C, H, W = x1_nchw.shape
    Cr = params["w_dc"].shape[0]
    x1 = x1_nchw.reshape(N, C, H * W).astype(jnp.float32)
    x2 = x2_nchw.reshape(N, C, H * W).astype(jnp.float32)
    b = params["b"]

    xcat = jnp.concatenate([x1, x2], axis=1)                        # (N,2C,HW)
    feat = (jnp.einsum("oc,nch->noh", params["w_init"], xcat)
            + b[:, 0][None, :, None])
    pooled = jnp.mean(feat, axis=2)                                 # (N, C)
    z = jax.nn.relu(jnp.einsum("rc,nc->nr", params["w_dc"], pooled)
                    + b[:Cr, 1][None, :])
    ab = jnp.einsum("or,nr->no", params["w_ic"], z)                 # (N, 2C)
    ab1 = ab[:, :C] + b[:, 2][None, :]
    ab2 = ab[:, C:] + b[:, 3][None, :]
    mx = jnp.maximum(ab1, ab2)
    e1 = jnp.exp(ab1 - mx)
    e2 = jnp.exp(ab2 - mx)
    a1 = e1 / (e1 + e2)
    a2 = e2 / (e1 + e2)
    v = x1 * a1[:, :, None] + x2 * a2[:, :, None]
    return v.reshape(N, C, H, W).astype(x1_nchw.dtype)


# ----------------------------------------------------------------------------
# Deterministic parameter init (matches the PyTorch layer shapes)
# ----------------------------------------------------------------------------

def init_asyca_params(key, num_features, ratio):
    C = num_features
    Cr = C // ratio
    keys = jax.random.split(key, 6)

    def u(k, shape, fan_in):
        s = 1.0 / math.sqrt(fan_in)
        return jax.random.uniform(k, shape, jnp.float32, -s, s)

    # PyTorch Conv2d(kernel=1) weight is (Cout, Cin, 1, 1); stored as
    # (Cout, Cin) so the kernel computes y = W @ x on a (Cin, 1) column.
    w_init = u(keys[0], (C, 2 * C), 2 * C)          # conv_init
    b_init = u(keys[1], (C,), 2 * C)
    w_dc = u(keys[2], (Cr, C), C)                   # conv_dc
    b_dc = u(keys[3], (Cr,), C)
    w_ic = u(keys[4], (2 * C, Cr), Cr)              # conv_ic
    b_ic = u(keys[5], (2 * C,), Cr)

    # Pack the four bias vectors into one (C, 4) array (fewer BlockSpecs /
    # DMA descriptors; b_dc lives in the first Cr rows of column 1).
    b_dc_pad = jnp.zeros((C,), jnp.float32).at[:Cr].set(b_dc)
    b_packed = jnp.stack([b_init, b_dc_pad, b_ic[:C], b_ic[C:]], axis=1)

    return {"w_init": w_init, "w_dc": w_dc, "w_ic": w_ic, "b": b_packed}


# ----------------------------------------------------------------------------
# Main
# ----------------------------------------------------------------------------

if __name__ == "__main__":
    num_features = 32
    ratio = 4
    batch, H, W = 2, 16, 16

    kx1, kx2, kp = jax.random.split(jax.random.PRNGKey(0), 3)
    x1 = jax.random.normal(kx1, (batch, num_features, H, W), jnp.float32)
    x2 = jax.random.normal(kx2, (batch, num_features, H, W), jnp.float32)
    params = init_asyca_params(kp, num_features, ratio)

    out = asyca_forward(params, x1, x2)
    out = jax.block_until_ready(out)

    assert out.shape == (batch, num_features, H, W), out.shape
    assert bool(jnp.all(jnp.isfinite(out)))

    ref = asyca_reference(params, x1, x2)
    max_err = float(jnp.max(jnp.abs(out - ref)))
    assert bool(jnp.allclose(out, ref, rtol=1e-5, atol=1e-4)), max_err

    print("KERNEL_OK")
</pallas_src>

<mosaic_0001>
module attributes {stable_mosaic.version = 11 : i64} {
  func.func @_asyca_kernel(%arg0: i32, %arg1: memref<1x32x256xf32, #tpu.memory_space<vmem>>, %arg2: memref<1x32x256xf32, #tpu.memory_space<vmem>>, %arg3: memref<32x64xf32, #tpu.memory_space<vmem>>, %arg4: memref<8x32xf32, #tpu.memory_space<vmem>>, %arg5: memref<64x8xf32, #tpu.memory_space<vmem>>, %arg6: memref<32x4xf32, #tpu.memory_space<vmem>>, %arg7: memref<1x32x256xf32, #tpu.memory_space<vmem>>) attributes {dimension_semantics = [#tpu.dimension_semantics<parallel>], iteration_bounds = array<i64: 2>, scalar_prefetch = 0 : i64, scratch_operands = 0 : i64, tpu.core_type = #tpu.core_type<tc>, window_params = [{transform_indices = @transform_0, window_bounds = array<i64: 1, 32, 256>}, {transform_indices = @transform_1, window_bounds = array<i64: 1, 32, 256>}, {pipeline_mode = #tpu.pipeline_mode<synchronous>, transform_indices = @transform_2, window_bounds = array<i64: 32, 64>}, {pipeline_mode = #tpu.pipeline_mode<synchronous>, transform_indices = @transform_3, window_bounds = array<i64: 8, 32>}, {pipeline_mode = #tpu.pipeline_mode<synchronous>, transform_indices = @transform_4, window_bounds = array<i64: 64, 8>}, {pipeline_mode = #tpu.pipeline_mode<synchronous>, transform_indices = @transform_5, window_bounds = array<i64: 32, 4>}, {transform_indices = @transform_6, window_bounds = array<i64: 1, 32, 256>}]} {
    %c0 = arith.constant 0 : index
    %c0_0 = arith.constant 0 : index
    %c0_1 = arith.constant 0 : index
    %0 = vector.load %arg1[%c0, %c0_0, %c0_1] : memref<1x32x256xf32, #tpu.memory_space<vmem>>, vector<1x32x256xf32>
    %1 = vector.shape_cast %0 : vector<1x32x256xf32> to vector<32x256xf32>
    %c0_2 = arith.constant 0 : index
    %c0_3 = arith.constant 0 : index
    %c0_4 = arith.constant 0 : index
    %2 = vector.load %arg2[%c0_2, %c0_3, %c0_4] : memref<1x32x256xf32, #tpu.memory_space<vmem>>, vector<1x32x256xf32>
    %3 = vector.shape_cast %2 : vector<1x32x256xf32> to vector<32x256xf32>
    %cst = arith.constant dense<0.000000e+00> : vector<32xf32>
    %4 = vector.multi_reduction <add>, %1, %cst [1] : vector<32x256xf32> to vector<32xf32>
    %5 = vector.shape_cast %4 : vector<32xf32> to vector<32x1xf32>
    %cst_5 = arith.constant 2.560000e+02 : f32
    %6 = vector.broadcast %cst_5 : f32 to vector<32x1xf32>
    %7 = arith.divf %5, %6 : vector<32x1xf32>
    %cst_6 = arith.constant dense<0.000000e+00> : vector<32xf32>
    %8 = vector.multi_reduction <add>, %3, %cst_6 [1] : vector<32x256xf32> to vector<32xf32>
    %9 = vector.shape_cast %8 : vector<32xf32> to vector<32x1xf32>
    %cst_7 = arith.constant 2.560000e+02 : f32
    %10 = vector.broadcast %cst_7 : f32 to vector<32x1xf32>
    %11 = arith.divf %9, %10 : vector<32x1xf32>
    %12 = tpu.concatenate %7, %11 in 0 : vector<32x1xf32>, vector<32x1xf32> -> vector<64x1xf32>
    %c0_8 = arith.constant 0 : index
    %c0_9 = arith.constant 0 : index
    %13 = vector.load %arg6[%c0_8, %c0_9] : memref<32x4xf32, #tpu.memory_space<vmem>>, vector<32x4xf32>
    %c0_10 = arith.constant 0 : index
    %c0_11 = arith.constant 0 : index
    %14 = vector.load %arg3[%c0_10, %c0_11] : memref<32x64xf32, #tpu.memory_space<vmem>>, vector<32x64xf32>
    %cst_12 = arith.constant dense<0.000000e+00> : vector<32x1xf32>
    %15 = tpu.matmul %14, %12, %cst_12 {dimension_numbers = #tpu.dot_dimension_numbers<[1], [0], [0], [1], [0, 0, 1, 1], [], []>} : vector<32x64xf32>, vector<64x1xf32>, vector<32x1xf32> -> vector<32x1xf32>
    %16 = vector.extract_strided_slice %13 {offsets = [0, 0], sizes = [32, 1], strides = [1, 1]} : vector<32x4xf32> to vector<32x1xf32>
    %17 = arith.addf %15, %16 : vector<32x1xf32>
    %c0_13 = arith.constant 0 : index
    %c0_14 = arith.constant 0 : index
    %18 = vector.load %arg4[%c0_13, %c0_14] : memref<8x32xf32, #tpu.memory_space<vmem>>, vector<8x32xf32>
    %cst_15 = arith.constant dense<0.000000e+00> : vector<8x1xf32>
    %19 = tpu.matmul %18, %17, %cst_15 {dimension_numbers = #tpu.dot_dimension_numbers<[1], [0], [0], [1], [0, 0, 1, 1], [], []>} : vector<8x32xf32>, vector<32x1xf32>, vector<8x1xf32> -> vector<8x1xf32>
    %20 = vector.extract_strided_slice %13 {offsets = [0, 1], sizes = [8, 1], strides = [1, 1]} : vector<32x4xf32> to vector<8x1xf32>
    %21 = arith.addf %19, %20 : vector<8x1xf32>
    %cst_16 = arith.constant 0.000000e+00 : f32
    %22 = vector.broadcast %cst_16 : f32 to vector<8x1xf32>
    %23 = arith.maximumf %21, %22 : vector<8x1xf32>
    %c0_17 = arith.constant 0 : index
    %c0_18 = arith.constant 0 : index
    %24 = vector.load %arg5[%c0_17, %c0_18] : memref<64x8xf32, #tpu.memory_space<vmem>>, vector<64x8xf32>
    %cst_19 = arith.constant dense<0.000000e+00> : vector<64x1xf32>
    %25 = tpu.matmul %24, %23, %cst_19 {dimension_numbers = #tpu.dot_dimension_numbers<[1], [0], [0], [1], [0, 0, 1, 1], [], []>} : vector<64x8xf32>, vector<8x1xf32>, vector<64x1xf32> -> vector<64x1xf32>
    %26 = vector.extract_strided_slice %25 {offsets = [0, 0], sizes = [32, 1], strides = [1, 1]} : vector<64x1xf32> to vector<32x1xf32>
    %27 = vector.extract_strided_slice %13 {offsets = [0, 2], sizes = [32, 1], strides = [1, 1]} : vector<32x4xf32> to vector<32x1xf32>
    %28 = arith.addf %26, %27 : vector<32x1xf32>
    %29 = vector.extract_strided_slice %25 {offsets = [32, 0], sizes = [32, 1], strides = [1, 1]} : vector<64x1xf32> to vector<32x1xf32>
    %30 = vector.extract_strided_slice %13 {offsets = [0, 3], sizes = [32, 1], strides = [1, 1]} : vector<32x4xf32> to vector<32x1xf32>
    %31 = arith.addf %29, %30 : vector<32x1xf32>
    %32 = arith.maximumf %28, %31 : vector<32x1xf32>
    %33 = arith.subf %28, %32 : vector<32x1xf32>
    %34 = math.exp %33 : vector<32x1xf32>
    %35 = arith.subf %31, %32 : vector<32x1xf32>
    %36 = math.exp %35 : vector<32x1xf32>
    %37 = arith.addf %34, %36 : vector<32x1xf32>
    %cst_20 = arith.constant 1.000000e+00 : f32
    %38 = vector.broadcast %cst_20 : f32 to vector<32x1xf32>
    %39 = arith.divf %38, %37 : vector<32x1xf32>
    %40 = arith.mulf %34, %39 : vector<32x1xf32>
    %41 = arith.mulf %36, %39 : vector<32x1xf32>
    %42 = vector.broadcast %40 : vector<32x1xf32> to vector<32x256xf32>
    %43 = arith.mulf %1, %42 : vector<32x256xf32>
    %44 = vector.broadcast %41 : vector<32x1xf32> to vector<32x256xf32>
    %45 = arith.mulf %3, %44 : vector<32x256xf32>
    %46 = arith.addf %43, %45 : vector<32x256xf32>
    %c0_21 = arith.constant 0 : index
    %c0_22 = arith.constant 0 : index
    %c0_23 = arith.constant 0 : index
    %47 = vector.load %arg7[%c0_21, %c0_22, %c0_23] : memref<1x32x256xf32, #tpu.memory_space<vmem>>, vector<1x32x256xf32>
    %48 = vector.shape_cast %47 : vector<1x32x256xf32> to vector<32x256xf32>
    %49 = vector.shape_cast %46 : vector<32x256xf32> to vector<1x32x256xf32>
    tpu.vector_store %arg7[%c0_21, %c0_22, %c0_23], %49 {strides = array<i32>} : memref<1x32x256xf32, #tpu.memory_space<vmem>>, vector<1x32x256xf32>,
    return
  }
  func.func @transform_0(%arg0: i32) -> (i32, i32, i32) {
    %c0_i32 = arith.constant 0 : i32
    %c0_i32_0 = arith.constant 0 : i32
    %c0_i32_1 = arith.constant 0 : i32
    return %arg0, %c0_i32, %c0_i32_0 : i32, i32, i32
  }
  func.func @transform_1(%arg0: i32) -> (i32, i32, i32) {
    %c0_i32 = arith.constant 0 : i32
    %c0_i32_0 = arith.constant 0 : i32
    %c0_i32_1 = arith.constant 0 : i32
    return %arg0, %c0_i32, %c0_i32_0 : i32, i32, i32
  }
  func.func @transform_2(%arg0: i32) -> (i32, i32) {
    %c0_i32 = arith.constant 0 : i32
    %c0_i32_0 = arith.constant 0 : i32
    %c0_i32_1 = arith.constant 0 : i32
    return %c0_i32, %c0_i32_0 : i32, i32
  }
  func.func @transform_3(%arg0: i32) -> (i32, i32) {
    %c0_i32 = arith.constant 0 : i32
    %c0_i32_0 = arith.constant 0 : i32
    %c0_i32_1 = arith.constant 0 : i32
    return %c0_i32, %c0_i32_0 : i32, i32
  }
  func.func @transform_4(%arg0: i32) -> (i32, i32) {
    %c0_i32 = arith.constant 0 : i32
    %c0_i32_0 = arith.constant 0 : i32
    %c0_i32_1 = arith.constant 0 : i32
    return %c0_i32, %c0_i32_0 : i32, i32
  }
  func.func @transform_5(%arg0: i32) -> (i32, i32) {
    %c0_i32 = arith.constant 0 : i32
    %c0_i32_0 = arith.constant 0 : i32
    %c0_i32_1 = arith.constant 0 : i32
    return %c0_i32, %c0_i32_0 : i32, i32
  }
  func.func @transform_6(%arg0: i32) -> (i32, i32, i32) {
    %c0_i32 = arith.constant 0 : i32
    %c0_i32_0 = arith.constant 0 : i32
    %c0_i32_1 = arith.constant 0 : i32
    return %arg0, %c0_i32, %c0_i32_0 : i32, i32, i32
  }
}

</mosaic_0001>

<bundles_post_ra>
// kernel: asyca_forward.1
= control target key start
LH: loop header
LB: loop body
LE: loop exit
PB: predicated region body
PF: predicated region fallthrough
CT: control target
= control target key end

     0   :  { %s883_s21 = smov 0   ;;  %s1045_s0 = inlined_call_operand.vmem [shape: f32[2,32,256], index: 0, kind: input, shape index: {}]   ;;  %s1046_s1 = inlined_call_operand.vmem [shape: f32[2,32,256], index: 1, kind: input, shape index: {}]   ;;  %s1047_s2 = inlined_call_operand.vmem [shape: f32[32,64], index: 2, kind: input, shape index: {}]   ;;  %s1048_s3 = inlined_call_operand.vmem [shape: f32[8,32], index: 3, kind: input, shape index: {}]   ;;  %s1049_s4 = inlined_call_operand.vmem [shape: f32[64,8], index: 4, kind: input, shape index: {}]   ;;  %s1050_s5 = inlined_call_operand.vmem [shape: f32[32,4], index: 5, kind: input, shape index: {}]   ;;  %s1051_s6 = inlined_call_operand.vmem [shape: f32[2,32,256], index: 6, kind: output, shape index: {}]  }
   0x1 LB: > { %s755_s22 = sadd.s32 4294967295, %s841_s21   ;;  %p759_p0 = scmp.ge.s32.totalorder %s841_s21, 1  ;;  %s841_s21 = sphi %s883_s21, %s16_s21  }
   0x2   : > { %p222_p1 = scmp.lt.s32.totalorder %s841_s21, 3 }
   0x4   : > { %p223_p2 = pnand %p759_p0, %p222_p1 }
   0x5   : > { %p257_p3 = scmp.lt.s32.totalorder (!%p223_p2), %s755_s22, 1  ;;  %s844_s16 = smov (!%p223_p2), 127  }
   0x6   : > { %226 = sbr.rel (%p223_p2) target bundleno = 759 (0x2f7), region = 44  ;;  %s845_s27 = smov (!%p223_p2), 126  }
   0x7   : > { %s846_s28 = smov (!%p223_p2), 125  }
   0xb   : > { %s1053_s22 = smov (!%p257_p3, %s755_s22), 1  ;;  %v843_v24 = vmov 256.0   ;;  %v331_v47 = vld [vmem:[%s1047_s2] sm:$0xff]  ;;  %vm335_vm1 = vcmask 523264   ;;  %v334_v48 = vld [vmem:[%s1047_s2 + $0x18] sm:$0xff]  ;;  %v332_v49 = vld [vmem:[%s1047_s2 + $0x8] sm:$0xff] }
   0xc   : > { %s891_s23 = sshll.u32 %s1053_s22, 6  ;;  %809 = vrcp.f32 %v843_v24  ;;  %v333_v50 = vld [vmem:[%s1047_s2 + $0x10] sm:$0xff]  ;;  %v327_v51 = vld [vmem:[%s1050_s5] sm:$0xff]  ;;  %v330_v52 = vld [vmem:[%s1050_s5 + $0x18] sm:$0xff]  ;;  %vm382_vm2 = vcmask 261120   ;;  %vm415_vm3 = vcmask 64512  }
   0xd   : > { %s266_s26 = scalar_lea.vmem %s1046_s1, %s891_s23  ;;  %s261_s29 = scalar_lea.vmem %s1045_s0, %s891_s23  ;;  %v329_v57 = vld [vmem:[%s1050_s5 + $0x10] sm:$0xff]  ;;  %v328_v58 = vld [vmem:[%s1050_s5 + $0x8] sm:$0xff]  ;;  %v377_v63 = vld [vmem:[%s1048_s3] sm:$0xff] }
   0xe   : > { %v897_v0 = vld [vmem:[%s266_s26 + $0x30] sm:$0xff]  ;;  %v899_v1 = vld [vmem:[%s266_s26 + $0x38] sm:$0xff]  ;;  %v919_v9 = vld [vmem:[%s266_s26 + $0x20] sm:$0xff]  ;;  %s1020_s25 = scalar_lea.vmem %s1051_s6, %s891_s23 }
   0xf   : > { %v901_v2 = vld [vmem:[%s266_s26 + $0x10] sm:$0xff]  ;;  %v320_v3 = vadd.f32 %v899_v1, %v897_v0  ;;  %v909_v4 = vld [vmem:[%s266_s26 + $0x18] sm:$0xff]  ;;  %v921_v10 = vld [vmem:[%s266_s26 + $0x28] sm:$0xff] }
  0x10   : > { %v314_v5 = vadd.f32 %v909_v4, %v901_v2  ;;  %v913_v6 = vld [vmem:[%s261_s29 + $0x30] sm:$0xff]  ;;  %v915_v7 = vld [vmem:[%s261_s29 + $0x38] sm:$0xff]  ;;  %v923_v11 = vld [vmem:[%s266_s26] sm:$0xff]  ;;  %v317_v15 = vadd.f32 %v921_v10, %v919_v9 }
  0x11   : > { %321 = vadd.xlane.f32.xlu0 %v320_v3  ;;  %v297_v8 = vadd.f32 %v915_v7, %v913_v6  ;;  %v925_v12 = vld [vmem:[%s266_s26 + $0x8] sm:$0xff]  ;;  %v927_v13 = vld [vmem:[%s261_s29 + $0x20] sm:$0xff]  ;;  %v937_v18 = vld [vmem:[%s261_s29 + $0x10] sm:$0xff] }
  0x12   : > { %315 = vadd.xlane.f32.xlu1 %v314_v5  ;;  %v929_v14 = vld [vmem:[%s261_s29 + $0x28] sm:$0xff]  ;;  %v311_v16 = vadd.f32 %v925_v12, %v923_v11  ;;  %v939_v19 = vld [vmem:[%s261_s29 + $0x18] sm:$0xff]  ;;  %v941_v20 = vld [vmem:[%s261_s29] sm:$0xff]  ;;  %v810_v25 = vpop.eup %809 }
  0x13   : > { %298 = vadd.xlane.f32.xlu2 %v297_v8  ;;  %v294_v17 = vadd.f32 %v929_v14, %v927_v13  ;;  %v943_v21 = vld [vmem:[%s261_s29 + $0x8] sm:$0xff]  ;;  %v291_v22 = vadd.f32 %v939_v19, %v937_v18  ;;  %v301_v26 = vmul.f32 256.0, %v810_v25  ;;  %vm305_vm0 = vweird.f32 %v810_v25  ;;  %v409_v24 = vld [vmem:[%s1049_s4 + $0x10] sm:$0xff] }
  0x14   : > { %v288_v23 = vadd.f32 %v943_v21, %v941_v20 }
  0x15   : > { %v302_v27 = vsub.f32 1.0, %v301_v26  ;;  %v410_v26 = vld [vmem:[%s1049_s4 + $0x18] sm:$0xff] }
  0x17   : > { %v303_v28 = vmul.f32 %v810_v25, %v302_v27  ;;  %v414_v27 = vld [vmem:[%s1049_s4 + $0x38] sm:$0xff] }
  0x19   : > { %318 = vadd.xlane.f32.xlu0 %v317_v15  ;;  %v304_v29 = vadd.f32 %v810_v25, %v303_v28 }
  0x1a   : > { %312 = vadd.xlane.f32.xlu1 %v311_v16  ;;  %v407_v16 = vld [vmem:[%s1049_s4] sm:$0xff] }
  0x1b   : > { %295 = vadd.xlane.f32.xlu2 %v294_v17  ;;  %v306_v30 = vsel %vm305_vm0, %v810_v25, %v304_v29  ;;  %v411_v17 = vld [vmem:[%s1049_s4 + $0x20] sm:$0xff]  ;;  %v413_v25 = vld [vmem:[%s1049_s4 + $0x30] sm:$0xff] }
  0x21   : > { %292 = vadd.xlane.f32.xlu0 %v291_v22  ;;  %v408_v22 = vld [vmem:[%s1049_s4 + $0x8] sm:$0xff] }
  0x22   : > { %289 = vadd.xlane.f32.xlu1 %v288_v23  ;;  %v412_v23 = vld [vmem:[%s1049_s4 + $0x28] sm:$0xff] }
  0x33   : > { %379 = vrot.lane.b32.xlu2 %v327_v51, %s844_s16 }
  0x35   : > { %484 = vrot.lane.b32.xlu0 %v327_v51, %s845_s27 }
  0x3b   : > { %486 = vrot.lane.b32.xlu1 %v328_v58, %s845_s27  ;;  %488 = vrot.lane.b32.xlu2 %v329_v57, %s845_s27 }
  0x3d   : > { %490 = vrot.lane.b32.xlu0 %v330_v52, %s845_s27 }
  0x43   : > { %502 = vrot.lane.b32.xlu1 %v328_v58, %s846_s28  ;;  %500 = vrot.lane.b32.xlu2 %v327_v51, %s846_s28 }
  0x45   : > { %504 = vrot.lane.b32.xlu0 %v329_v57, %s846_s28 }
  0x4b   : > { %506 = vrot.lane.b32.xlu2 %v330_v52, %s846_s28 }
  0x84   : > { %v322_v31 = vpop.xlane.xlu0 %321 }
  0x85   : > { %v326_v32 = vmul.f32 %v322_v31, %v306_v30  ;;  %v316_v33 = vpop.xlane.xlu1 %315 }
  0x86   : > { %v299_v34 = vpop.xlane.xlu2 %298  ;;  %v324_v38 = vmul.f32 %v316_v33, %v306_v30 }
  0x87   : > { %356 = vmatpush.msra.mxu0 %v326_v32  ;;  %784 = vmatpush.msra.mxu1 %v326_v32  ;;  %v310_v41 = vmul.f32 %v306_v30, %v299_v34 }
  0x8c   : > { %v319_v35 = vpop.xlane.xlu0 %318 }
  0x8d   : > { %v325_v36 = vmul.f32 %v319_v35, %v306_v30  ;;  %v313_v37 = vpop.xlane.xlu1 %312 }
  0x8e   : > { %v323_v39 = vmul.f32 %v313_v37, %v306_v30  ;;  %v296_v40 = vpop.xlane.xlu2 %295 }
  0x8f   : > { %357 = vmatpush.msra.mxu0 %v325_v36  ;;  %785 = vmatpush.msra.mxu1 %v325_v36  ;;  %v309_v42 = vmul.f32 %v306_v30, %v296_v40  ;;  %v847_v40 = vmov 0  }
  0x90   : > { %807 = vset.pattern.permute.xlu2 %v847_v40  ;;  %806 = vset.pattern.permute.xlu1 %v847_v40 }
  0x91   : > { %358 = vmatpush.msra.mxu0 %v324_v38  ;;  %786 = vmatpush.msra.mxu1 %v324_v38 }
  0x92   : > { %808 = vset.pattern.permute.xlu0 %v847_v40 }
  0x93   : > { %359 = vmatpush.msra.mxu0 %v323_v39  ;;  %787 = vmatpush.msra.mxu1 %v323_v39 }
  0x94   : > { %v293_v43 = vpop.xlane.xlu0 %292 }
  0x95   : > { %360 = vmatpush.msra.mxu0 %v310_v41  ;;  %788 = vmatpush.msra.mxu1 %v310_v41  ;;  %v308_v44 = vmul.f32 %v306_v30, %v293_v43  ;;  %v290_v45 = vpop.xlane.xlu1 %289 }
  0x96   : > { %v307_v46 = vmul.f32 %v306_v30, %v290_v45  ;;  %v380_v3 = vpop.permute.xlu2 %379 }
  0x97   : > { %361 = vmatpush.msra.mxu0 %v309_v42  ;;  %789 = vmatpush.msra.mxu1 %v309_v42 }
  0x99   : > { %362 = vmatpush.msra.mxu0 %v308_v44  ;;  %790 = vmatpush.msra.mxu1 %v308_v44 }
  0x9b   : > { %363 = vmatpush.msra.mxu0 %v307_v46  ;;  %791 = vmatpush.msra.mxu1 %v307_v46 }
  0x9c   : > { %766 = vmatmul.msk.f32.vlgmr.msra.gmra.mxu0 %vm335_vm1, %v331_v47  ;;  %769 = vmatmul.msk.f32.vlgmr.msra.gmra.mxu1 %vm335_vm1, %v334_v48 }
  0x9e   : > { %v489_v28 = vpop.permute.xlu2 %488 }
  0xa4   : > { %767 = vmatmul.msk.f32.gmra.mxu0 %vm335_vm1, %v332_v49 }
  0xa6   : > { %v501_v31 = vpop.permute.xlu2 %500 }
  0xa7   : > { %v485_v29 = vpop.permute.xlu0 %484 }
  0xac   : > { %768 = vmatmul.msk.f32.gmra.mxu0 %vm335_vm1, %v333_v50 }
  0xad   : > { %v487_v30 = vpop.permute.xlu1 %486 }
  0xaf   : > { %v491_v37 = vpop.permute.xlu0 %490 }
  0xb5   : > { %v503_v41 = vpop.permute.xlu1 %502 }
 0x119   : > { %v365_v53 = vpop.f32.mrf.mxu0  ;;  %v374_v54 = vpop.f32.mrf.mxu1 }
 0x11a   : > { %v375_v55 = vadd.f32 %v374_v54, %v330_v52  ;;  %v366_v62 = vadd.f32 %v365_v53, %v327_v51  ;;  %v505_v51 = vpop.permute.xlu0 %504 }
 0x11c   : > { %398 = vmatpush.msrb.mxu1 %v375_v55 }
 0x121   : > { %v368_v56 = vpop.f32.mrf.mxu0 }
 0x122   : > { %v369_v61 = vadd.f32 %v368_v56, %v328_v58 }
 0x129   : > { %v371_v59 = vpop.f32.mrf.mxu0 }
 0x12a   : > { %v372_v60 = vadd.f32 %v371_v59, %v329_v57 }
 0x12c   : > { %399 = vmatpush.msrb.mxu1 %v372_v60 }
 0x12e   : > { %400 = vmatpush.msrb.mxu1 %v369_v61 }
 0x130   : > { %401 = vmatpush.msrb.mxu1 %v366_v62 }
 0x131   : > { %770 = vmatmul.msk.f32.vlgmr.msrb.gmra.mxu1 %vm382_vm2, %v377_v63 }
 0x1ae   : > { %v403_v5 = vpop.f32.mrf.mxu1 }
 0x1af   : > { %v404_v8 = vadd.f32 %v403_v5, %v380_v3  ;;  %v507_v3 = vpop.permute.xlu2 %506 }
 0x1b1   : > { %v406_v15 = vmax.f32 %v404_v8, 0.0 }
 0x1b3   : > { %455 = vmatpush.msra.mxu2 %v406_v15  ;;  %792 = vmatpush.msra.mxu3 %v406_v15 }
 0x1b4   : > { %771 = vmatmul.msk.f32.vlgmr.msra.gmra.mxu2 %vm415_vm3, %v407_v16  ;;  %775 = vmatmul.msk.f32.vlgmr.msra.gmra.mxu3 %vm415_vm3, %v411_v17 }
 0x1bc   : > { %772 = vmatmul.msk.f32.gmra.mxu2 %vm415_vm3, %v408_v22  ;;  %776 = vmatmul.msk.f32.gmra.mxu3 %vm415_vm3, %v412_v23 }
 0x1c4   : > { %773 = vmatmul.msk.f32.gmra.mxu2 %vm415_vm3, %v409_v24  ;;  %777 = vmatmul.msk.f32.gmra.mxu3 %vm415_vm3, %v413_v25 }
 0x1cc   : > { %774 = vmatmul.msk.f32.gmra.mxu2 %vm415_vm3, %v410_v26  ;;  %778 = vmatmul.msk.f32.gmra.mxu3 %vm415_vm3, %v414_v27 }
 0x237   : > { %v457_v32 = vpop.f32.mrf.mxu2  ;;  %v469_v33 = vpop.f32.mrf.mxu3 }
 0x238   : > { %v496_v34 = vadd.f32 %v485_v29, %v457_v32  ;;  %v512_v35 = vadd.f32 %v501_v31, %v469_v33 }
 0x23a   : > { %v516_v36 = vmax.f32 %v496_v34, %v512_v35 }
 0x23c   : > { %v520_v38 = vsub.f32 %v496_v34, %v516_v36  ;;  %v532_v39 = vsub.f32 %v512_v35, %v516_v36 }
 0x23e   : > { %v524_v42 = vmul.f32 1.442695, %v520_v38  ;;  %v536_v43 = vmul.f32 1.442695, %v532_v39 }
 0x23f   : > { %v460_v44 = vpop.f32.mrf.mxu2  ;;  %v472_v45 = vpop.f32.mrf.mxu3 }
 0x240   : > { %811 = vpow2.f32 %v524_v42  ;;  %v497_v46 = vadd.f32 %v487_v30, %v460_v44  ;;  %v513_v47 = vadd.f32 %v503_v41, %v472_v45 }
 0x241   : > { %813 = vpow2.f32 %v536_v43 }
 0x242   : > { %v517_v48 = vmax.f32 %v497_v46, %v513_v47 }
 0x244   : > { %v521_v49 = vsub.f32 %v497_v46, %v517_v48  ;;  %v533_v50 = vsub.f32 %v513_v47, %v517_v48 }
 0x246   : > { %v812_v52 = vpop.eup %811  ;;  %v526_v53 = vmul.f32 1.442695, %v521_v49  ;;  %v538_v54 = vmul.f32 1.442695, %v533_v50 }
 0x247   : > { %v814_v55 = vpop.eup %813  ;;  %v463_v56 = vpop.f32.mrf.mxu2 }
 0x248   : > { %v475_v57 = vpop.f32.mrf.mxu3  ;;  %v544_v58 = vadd.f32 %v814_v55, %v812_v52  ;;  %815 = vpow2.f32 %v526_v53  ;;  %v498_v59 = vadd.f32 %v489_v28, %v463_v56 }
 0x249   : > { %v514_v60 = vadd.f32 %v505_v51, %v475_v57  ;;  %817 = vpow2.f32 %v538_v54 }
 0x24a   : > { %819 = vrcp.f32 %v544_v58  ;;  %v559_v32 = vand.u32 2147483648, %v544_v58  ;;  %v557_v34 = vand.u32 2147483647, %v544_v58  ;;  %vm553_vm5 = vweird.f32 %v544_v58 }
 0x24b   : > { %v518_v61 = vmax.f32 %v498_v59, %v514_v60 }
 0x24c   : > { %v560_v42 = vor.u32 1.1754944e-38, %v559_v32  ;;  %vm558_vm7 = vcmp.eq.f32.partialorder %v557_v34, 8.507059e+37 }
 0x24d   : > { %v522_v62 = vsub.f32 %v498_v59, %v518_v61  ;;  %v534_v63 = vsub.f32 %v514_v60, %v518_v61 }
 0x24e   : > { %v816_v5 = vpop.eup %815 }
 0x24f   : > { %v528_v8 = vmul.f32 1.442695, %v522_v62  ;;  %v540_v15 = vmul.f32 1.442695, %v534_v63  ;;  %v1008_v16 = vpop.eup %817  ;;  %v466_v17 = vpop.f32.mrf.mxu2 }
 0x250   : > { %v478_v22 = vpop.f32.mrf.mxu3  ;;  %v820_v23 = vpop.eup %819  ;;  %v545_v24 = vadd.f32 %v1008_v16, %v816_v5  ;;  %v499_v25 = vadd.f32 %v491_v37, %v466_v17 }
 0x251   : > { %821 = vpow2.f32 %v528_v8  ;;  %v515_v26 = vadd.f32 %v507_v3, %v478_v22  ;;  %v549_v27 = vmul.f32 %v820_v23, %v544_v58  ;;  %vm554_vm4 = vweird.f32 %v820_v23 }
 0x252   : > { %823 = vpow2.f32 %v540_v15  ;;  %vm555_vm6 = vmor %vm553_vm5, %vm554_vm4  ;;  %v574_v49 = vand.u32 2147483648, %v545_v24  ;;  %v572_v51 = vand.u32 2147483647, %v545_v24  ;;  %vm568_vm9 = vweird.f32 %v545_v24 }
 0x253   : > { %825 = vrcp.f32 %v545_v24  ;;  %v519_v28 = vmax.f32 %v499_v25, %v515_v26  ;;  %v550_v29 = vsub.f32 1.0, %v549_v27 }
 0x254   : > { %v575_v59 = vor.u32 1.1754944e-38, %v574_v49  ;;  %vm573_vm11 = vcmp.eq.f32.partialorder %v572_v51, 8.507059e+37 }
 0x255   : > { %v523_v30 = vsub.f32 %v499_v25, %v519_v28  ;;  %v535_v31 = vsub.f32 %v515_v26, %v519_v28  ;;  %v551_v33 = vmul.f32 %v820_v23, %v550_v29 }
 0x257   : > { %v822_v35 = vpop.eup %821  ;;  %v530_v36 = vmul.f32 1.442695, %v523_v30  ;;  %v542_v38 = vmul.f32 1.442695, %v535_v31  ;;  %v552_v40 = vadd.f32 %v820_v23, %v551_v33 }
 0x258   : > { %v824_v39 = vpop.eup %823 }
 0x259   : > { %v826_v41 = vpop.eup %825  ;;  %v546_v37 = vadd.f32 %v824_v39, %v822_v35  ;;  %827 = vpow2.f32 %v530_v36  ;;  %v556_v43 = vsel %vm555_vm6, %v820_v23, %v552_v40 }
 0x25a   : > { %829 = vpow2.f32 %v542_v38  ;;  %v564_v44 = vmul.f32 %v826_v41, %v545_v24  ;;  %v561_v45 = vsel %vm558_vm7, %v560_v42, %v556_v43  ;;  %vm569_vm8 = vweird.f32 %v826_v41 }
 0x25b   : > { %831 = vrcp.f32 %v546_v37  ;;  %v612_v46 = vmul.f32 %v814_v55, %v561_v45  ;;  %v608_v47 = vmul.f32 %v812_v52, %v561_v45  ;;  %vm570_vm10 = vmor %vm568_vm9, %vm569_vm8  ;;  %v589_v63 = vand.u32 2147483648, %v546_v37 }
 0x25c   : > { %v565_v48 = vsub.f32 1.0, %v564_v44  ;;  %v587_v8 = vand.u32 2147483647, %v546_v37  ;;  %vm583_vm13 = vweird.f32 %v546_v37 }
 0x25d   : > { %646 = vperm.xlu2 %807, %v612_v46   ;;  %618 = vperm.xlu1 %806, %v608_v47   ;;  %v590_v22 = vor.u32 1.1754944e-38, %v589_v63 }
 0x25e   : > { %v566_v50 = vmul.f32 %v826_v41, %v565_v48  ;;  %vm588_vm15 = vcmp.eq.f32.partialorder %v587_v8, 8.507059e+37 }
 0x25f   : > { %v828_v53 = vpop.eup %827 }
 0x260   : > { %v830_v54 = vpop.eup %829  ;;  %v567_v56 = vadd.f32 %v826_v41, %v566_v50 }
 0x261   : > { %v832_v57 = vpop.eup %831  ;;  %v547_v58 = vadd.f32 %v830_v54, %v828_v53 }
 0x262   : > { %v571_v60 = vsel %vm570_vm10, %v826_v41, %v567_v56  ;;  %v579_v61 = vmul.f32 %v832_v57, %v546_v37  ;;  %vm584_vm12 = vweird.f32 %v832_v57 }
 0x263   : > { %833 = vrcp.f32 %v547_v58  ;;  %v576_v52 = vsel %vm573_vm11, %v575_v59, %v571_v60  ;;  %vm585_vm14 = vmor %vm583_vm13, %vm584_vm12  ;;  %v604_v29 = vand.u32 2147483648, %v547_v58  ;;  %v602_v30 = vand.u32 2147483647, %v547_v58 }
 0x264   : > { %v609_v55 = vmul.f32 %v816_v5, %v576_v52  ;;  %v580_v62 = vsub.f32 1.0, %v579_v61  ;;  %vm598_vm1 = vweird.f32 %v547_v58 }
 0x265   : > { %v605_v32 = vor.u32 1.1754944e-38, %v604_v29  ;;  %vm603_vm3 = vcmp.eq.f32.partialorder %v602_v30, 8.507059e+37 }
 0x266   : > { %623 = vperm.xlu0 %808, %v609_v55   ;;  %v581_v3 = vmul.f32 %v832_v57, %v580_v62 }
 0x268   : > { %v582_v15 = vadd.f32 %v832_v57, %v581_v3 }
 0x269   : > { %v834_v17 = vpop.eup %833 }
 0x26a   : > { %v586_v23 = vsel %vm585_vm14, %v832_v57, %v582_v15  ;;  %v594_v24 = vmul.f32 %v834_v17, %v547_v58  ;;  %vm599_vm0 = vweird.f32 %v834_v17 }
 0x26b   : > { %v591_v25 = vsel %vm588_vm15, %v590_v22, %v586_v23  ;;  %vm600_vm2 = vmor %vm598_vm1, %vm599_vm0 }
 0x26c   : > { %v610_v26 = vmul.f32 %v822_v35, %v591_v25  ;;  %v614_v27 = vmul.f32 %v824_v39, %v591_v25  ;;  %v595_v28 = vsub.f32 1.0, %v594_v24  ;;  %v613_v35 = vmul.f32 %v1008_v16, %v576_v52 }
 0x26e   : > { %628 = vperm.xlu2 %807, %v610_v26   ;;  %656 = vperm.xlu0 %808, %v614_v27   ;;  %v596_v5 = vmul.f32 %v834_v17, %v595_v28 }
 0x270   : > { %v597_v31 = vadd.f32 %v834_v17, %v596_v5 }
 0x272   : > { %v601_v33 = vsel %vm600_vm2, %v834_v17, %v597_v31 }
 0x273   : > { %v606_v34 = vsel %vm603_vm3, %v605_v32, %v601_v33 }
 0x274   : > { %v615_v36 = vmul.f32 %v830_v54, %v606_v34  ;;  %v611_v38 = vmul.f32 %v828_v53, %v606_v34 }
 0x276   : > { %661 = vperm.xlu2 %807, %v615_v36   ;;  %633 = vperm.xlu1 %806, %v611_v38  }
 0x27e   : > { %651 = vperm.xlu1 %806, %v613_v35  }
 0x2b7   : > { %v647_v39 = vpop.permute.xlu2 %646 }
 0x2b8   : > { %v664_v41 = vmul.f32 %v647_v39, %v923_v11  ;;  %v665_v37 = vmul.f32 %v647_v39, %v925_v12 }
 0x2c8   : > { %v629_v45 = vpop.permute.xlu2 %628 }
 0x2cf   : > { %v619_v40 = vpop.permute.xlu1 %618 }
 0x2d0   : > { %v636_v42 = vmul.f32 %v619_v40, %v941_v20  ;;  %v637_v43 = vmul.f32 %v619_v40, %v943_v21  ;;  %v640_v20 = vmul.f32 %v629_v45, %v927_v13  ;;  %v641_v21 = vmul.f32 %v629_v45, %v929_v14  ;;  %v662_v50 = vpop.permute.xlu2 %661 }
 0x2d1   : > { %v670_v53 = vmul.f32 %v662_v50, %v897_v0  ;;  %v671_v13 = vmul.f32 %v662_v50, %v899_v1 }
 0x2d2   : > { %v672_v16 = vadd.f32 %v664_v41, %v636_v42  ;;  %v673_v44 = vadd.f32 %v665_v37, %v637_v43 }
 0x2d4   : > { %680 = vst [vmem:[%s1020_s25] sm:$0xff] %v672_v16 }
 0x2d5   : > { %681 = vst [vmem:[%s1020_s25 + $0x8] sm:$0xff] %v673_v44 }
 0x2d8   : > { %v624_v11 = vpop.permute.xlu0 %623 }
 0x2d9   : > { %v638_v57 = vmul.f32 %v624_v11, %v937_v18  ;;  %v639_v58 = vmul.f32 %v624_v11, %v939_v19 }
 0x2e0   : > { %v657_v12 = vpop.permute.xlu0 %656 }
 0x2e1   : > { %v668_v46 = vmul.f32 %v657_v12, %v919_v9  ;;  %v669_v47 = vmul.f32 %v657_v12, %v921_v10 }
 0x2e3   : > { %v676_v48 = vadd.f32 %v668_v46, %v640_v20  ;;  %v677_v49 = vadd.f32 %v669_v47, %v641_v21 }
 0x2e5   : > { %684 = vst [vmem:[%s1020_s25 + $0x20] sm:$0xff] %v676_v48 }
 0x2e6   : > { %685 = vst [vmem:[%s1020_s25 + $0x28] sm:$0xff] %v677_v49 }
 0x2e8   : > { %v634_v51 = vpop.permute.xlu1 %633 }
 0x2e9   : > { %v642_v54 = vmul.f32 %v634_v51, %v913_v6  ;;  %v643_v14 = vmul.f32 %v634_v51, %v915_v7 }
 0x2eb   : > { %v678_v56 = vadd.f32 %v670_v53, %v642_v54  ;;  %v679_v9 = vadd.f32 %v671_v13, %v643_v14 }
 0x2ed   : > { %686 = vst [vmem:[%s1020_s25 + $0x30] sm:$0xff] %v678_v56 }
 0x2ee   : > { %687 = vst [vmem:[%s1020_s25 + $0x38] sm:$0xff] %v679_v9 }
 0x2f0   : > { %v652_v10 = vpop.permute.xlu1 %651 }
 0x2f1   : > { %v666_v59 = vmul.f32 %v652_v10, %v901_v2  ;;  %v667_v0 = vmul.f32 %v652_v10, %v909_v4 }
 0x2f3   : > { %v674_v60 = vadd.f32 %v666_v59, %v638_v57  ;;  %v675_v61 = vadd.f32 %v667_v0, %v639_v58 }
 0x2f5   : > { %682 = vst [vmem:[%s1020_s25 + $0x10] sm:$0xff] %v674_v60 }
 0x2f6   : > { %683 = vst [vmem:[%s1020_s25 + $0x18] sm:$0xff] %v675_v61 }
 0x2f7 PF: > { %s16_s21 = sadd.s32 1, %s841_s21  }
 0x2f8   : > { %p13_p4 = scmp.ge.s32.totalorder %s16_s21, 4  }
 0x2fa   :  { %15 = sbr.rel (!%p13_p4) target bundleno = 1 (0x1), region = 77 }

</bundles_post_ra>
